<compile_context>
chip_gen: v7x
topology: tpu7x:2x2x1
jax: 0.10.0
libtpu: 0.0.40
codegen_flags: <defaults>
</compile_context>

<pallas_src>
import functools

import jax
import jax.numpy as jnp
from jax.experimental import pallas as pl
from jax.experimental.pallas import tpu as pltpu


# --------------------------------------------------------------------------------------
# Helpers
# --------------------------------------------------------------------------------------

def _apply_focal(logpt, gamma):
    """loss = -(1 - pt)^gamma * logpt, with cheap VPU paths for small integer gamma."""
    pt = jnp.exp(logpt)
    g = float(gamma)
    if g == 0.0:
        return -logpt
    if g.is_integer() and 0 < g <= 8:
        # Integer gamma: repeated VPU multiplies instead of EUP log+exp (pow).
        w = 1.0 - pt
        fw = w
        for _ in range(int(g) - 1):
            fw = fw * w
        return -(fw * logpt)
    return -(jnp.power(1.0 - pt, g) * logpt)


def _tpu_defaults():
    """Per-generation (num_cores, vmem_limit_bytes, target block bytes for logits+targets)."""
    mib = 1024 * 1024
    kind = ""
    try:
        kind = (jax.devices()[0].device_kind or "").lower()
    except Exception:
        kind = ""
    if "v7" in kind:
        # 64 MiB VMEM per TensorCore, ~3.2 TB/s HBM, 2 TensorCores per chip.
        return 2, 48 * mib, 3 * mib
    if "v6" in kind:
        return 1, 96 * mib, 8 * mib
    if "v5" in kind:
        if "lite" in kind or "v5e" in kind:
            return 1, 96 * mib, 8 * mib
        return 2, 96 * mib, 8 * mib          # v5p megacore
    if "v4" in kind:
        return 2, 96 * mib, 8 * mib          # megacore
    # Unknown generation: keep the conservative, known-good defaults.
    return 1, 32 * mib, 2 * mib


# --------------------------------------------------------------------------------------
# N-D (NCHW-style) kernel: blocks are (C, t_hw), classes on sublanes, spatial on lanes.
# --------------------------------------------------------------------------------------

def _focal_kernel_nchw(x_ref, t_ref, out_ref, acc_ref, *, gamma, hw, t_hw,
                       n_full_blocks, j_per_core, need_mask):
    c = pl.program_id(0)   # core-split axis
    b = pl.program_id(1)   # batch
    j = pl.program_id(2)   # spatial block within this core's range

    # First iteration of this core's range: zero the vector accumulator.
    @pl.when((b == 0) & (j == 0))
    def _():
        acc_ref[...] = jnp.zeros_like(acc_ref)

    # Block is (C, t_hw): classes on sublanes, spatial rows on lanes.
    x = x_ref[...].astype(jnp.float32)                        # (C, t_hw)

    # Numerically-stable log_softmax over the class (sublane) axis.
    m = jnp.max(x, axis=0, keepdims=True)                     # (1, t_hw)
    s = x - m
    lse = jnp.log(jnp.sum(jnp.exp(s), axis=0, keepdims=True))
    logp = s - lse                                            # (C, t_hw)

    # gather(1, target) as a one-hot select along the class axis.
    tgt = t_ref[...]                                          # (1, t_hw) int32
    cls = jax.lax.broadcasted_iota(jnp.int32, logp.shape, 0)
    logpt = jnp.sum(jnp.where(cls == tgt, logp, 0.0),
                    axis=0, keepdims=True)                    # (1, t_hw)

    loss = _apply_focal(logpt, gamma)                         # (1, t_hw)

    if need_mask:
        gj = c * j_per_core + j                               # global spatial block index

        # Fast path: fully-valid block, plain vector accumulate (no iota/compare/select).
        @pl.when(gj < n_full_blocks)
        def _():
            acc_ref[...] += loss

        # Ragged last block / padding blocks from the core split: zero invalid lanes.
        # (jnp.where discards any NaN/Inf coming from the unspecified OOB data.)
        @pl.when(gj >= n_full_blocks)
        def _():
            lane = jax.lax.broadcasted_iota(jnp.int32, loss.shape, 1) + gj * t_hw
            acc_ref[...] += jnp.where(lane < hw, loss, 0.0)
    else:
        acc_ref[...] += loss

    # Last iteration of this core's range: single cross-lane reduce, write this core's
    # partial sum into its own 128-lane output slice.
    @pl.when((b == pl.num_programs(1) - 1) & (j == pl.num_programs(2) - 1))
    def _():
        total = jnp.sum(acc_ref[...])
        lane0 = jax.lax.broadcasted_iota(jnp.int32, out_ref.shape, 1) == 0
        out_ref[...] = jnp.where(lane0, total, 0.0)


def _focal_loss_nchw(x3, t3, *, gamma, size_average, t_hw, num_cores,
                     vmem_limit_bytes, block_bytes):
    B, C, hw = x3.shape
    n_valid = B * hw

    # ---- Tile sizing: big lane-dense blocks (generation-aware byte target), capped at
    # the 128-aligned spatial extent so tiny inputs get a single block.
    if t_hw is None:
        bytes_per_lane = C * jnp.dtype(x3.dtype).itemsize + 4    # logits column + int32 target
        t_hw = max(128, (block_bytes // bytes_per_lane) // 128 * 128)
    hw_padded = ((hw + 127) // 128) * 128
    t_hw = int(max(128, min(int(t_hw), hw_padded) // 128 * 128))

    j_total = -(-hw // t_hw)                       # total spatial blocks
    num_cores = max(1, min(int(num_cores), j_total))
    j_per_core = -(-j_total // num_cores)          # blocks per core
    n_full_blocks = hw // t_hw                     # blocks with no ragged lanes
    needs_clamp = (num_cores * j_per_core) != j_total
    need_mask = (hw % t_hw != 0) or needs_clamp

    def idx_map(c, b, j):
        gj = c * j_per_core + j
        if needs_clamp:
            # Padding blocks of the last core re-read the last real block (masked to 0).
            gj = jnp.minimum(gj, j_total - 1)
        return (b, 0, gj)

    kernel = functools.partial(
        _focal_kernel_nchw,
        gamma=float(gamma),
        hw=int(hw),
        t_hw=int(t_hw),
        n_full_blocks=int(n_full_blocks),
        j_per_core=int(j_per_core),
        need_mask=bool(need_mask),
    )

    out = pl.pallas_call(
        kernel,
        out_shape=jax.ShapeDtypeStruct((1, 128 * num_cores), jnp.float32),
        grid_spec=pltpu.PrefetchScalarGridSpec(
            num_scalar_prefetch=0,
            grid=(num_cores, B, j_per_core),
            in_specs=[
                # (B, C, HW): squeeze batch, classes on sublanes, spatial on lanes.
                pl.BlockSpec((None, C, t_hw), idx_map),
                # (B, 1, HW): lane-dense int32 targets.
                pl.BlockSpec((None, 1, t_hw), idx_map),
            ],
            # One 128-lane partial-sum slice per core.
            out_specs=pl.BlockSpec((1, 128), lambda c, b, j: (0, c)),
            scratch_shapes=[pltpu.VMEM((1, t_hw), jnp.float32)],
        ),
        compiler_params=pltpu.CompilerParams(
            dimension_semantics=("parallel", "arbitrary", "arbitrary"),
            vmem_limit_bytes=int(vmem_limit_bytes),
        ),
    )(x3, t3)

    total = jnp.sum(out)                 # sum the per-core partials (tiny)
    if size_average:
        total = total / jnp.float32(n_valid)
    return total


# --------------------------------------------------------------------------------------
# 2-D (N, C) kernel: classes on lanes, no wrapper transpose / extra HBM pass.
# --------------------------------------------------------------------------------------

def _focal_kernel_2d(x_ref, t_ref, out_ref, acc_ref, *, gamma, n, t_n, need_mask):
    i = pl.program_id(0)

    @pl.when(i == 0)
    def _():
        acc_ref[...] = jnp.zeros_like(acc_ref)

    x = x_ref[...].astype(jnp.float32)                        # (t_n, C)
    m = jnp.max(x, axis=1, keepdims=True)                     # (t_n, 1)
    s = x - m
    lse = jnp.log(jnp.sum(jnp.exp(s), axis=1, keepdims=True))
    logp = s - lse                                            # (t_n, C)

    tgt = t_ref[...]                                          # (t_n, 1) int32
    cls = jax.lax.broadcasted_iota(jnp.int32, logp.shape, 1)
    logpt = jnp.sum(jnp.where(cls == tgt, logp, 0.0),
                    axis=1, keepdims=True)                    # (t_n, 1)

    loss = _apply_focal(logpt, gamma)                         # (t_n, 1)

    if need_mask:
        row = jax.lax.broadcasted_iota(jnp.int32, loss.shape, 0) + i * t_n
        loss = jnp.where(row < n, loss, 0.0)

    acc_ref[...] += loss

    @pl.when(i == pl.num_programs(0) - 1)
    def _():
        total = jnp.sum(acc_ref[...])
        lane0 = jax.lax.broadcasted_iota(jnp.int32, out_ref.shape, 1) == 0
        out_ref[...] = jnp.where(lane0, total, 0.0)


def _focal_loss_2d(x2, t2, *, gamma, size_average, vmem_limit_bytes):
    N, C = x2.shape
    t_n = N if N <= 1024 else 1024                 # multiple of 8 or equal to full extent
    grid_n = -(-N // t_n)
    need_mask = (N % t_n) != 0

    kernel = functools.partial(
        _focal_kernel_2d, gamma=float(gamma), n=int(N), t_n=int(t_n),
        need_mask=bool(need_mask))

    out = pl.pallas_call(
        kernel,
        out_shape=jax.ShapeDtypeStruct((1, 128), jnp.float32),
        grid_spec=pltpu.PrefetchScalarGridSpec(
            num_scalar_prefetch=0,
            grid=(grid_n,),
            in_specs=[
                pl.BlockSpec((t_n, C), lambda i: (i, 0)),
                pl.BlockSpec((t_n, 1), lambda i: (i, 0)),
            ],
            out_specs=pl.BlockSpec((1, 128), lambda i: (0, 0)),
            scratch_shapes=[pltpu.VMEM((t_n, 1), jnp.float32)],
        ),
        compiler_params=pltpu.CompilerParams(
            dimension_semantics=("arbitrary",),
            vmem_limit_bytes=int(vmem_limit_bytes),
        ),
    )(x2, t2)

    total = jnp.sum(out)
    if size_average:
        total = total / jnp.float32(N)
    return total


# --------------------------------------------------------------------------------------
# Public wrapper (matches FocalLoss.forward semantics).
# --------------------------------------------------------------------------------------

def focal_loss(logits, target, *, gamma=0.0, size_average=True,
               t_hw=None, num_cores=None, block_bytes=None, vmem_limit_bytes=None):
    """logits: (B, C, H, W, ...) float or (N, C); target: matching int labels -> scalar loss.

    For best performance, call inside jax.jit so the tiny partial-sum reduce fuses.
    """
    det_cores, det_vmem, det_block = _tpu_defaults()
    if num_cores is None:
        num_cores = det_cores
    if vmem_limit_bytes is None:
        vmem_limit_bytes = det_vmem
    if block_bytes is None:
        block_bytes = det_block

    if logits.ndim > 2:
        B, C = logits.shape[0], logits.shape[1]
        x3 = logits.reshape(B, C, -1)                      # free view of NCHW; no transpose
        hw = x3.shape[2]
        t3 = target.reshape(B, 1, hw).astype(jnp.int32)    # lane-dense targets
        return _focal_loss_nchw(
            x3, t3, gamma=gamma, size_average=size_average, t_hw=t_hw,
            num_cores=num_cores, vmem_limit_bytes=vmem_limit_bytes,
            block_bytes=block_bytes)

    # Native 2-D path: (N, C) with classes on lanes (no wrapper transpose).
    x2 = logits
    N = x2.shape[0]
    t2 = target.reshape(N, 1).astype(jnp.int32)
    return _focal_loss_2d(x2, t2, gamma=gamma, size_average=size_average,
                          vmem_limit_bytes=vmem_limit_bytes)


# --------------------------------------------------------------------------------------
# Pure-JAX reference and self-test
# --------------------------------------------------------------------------------------

def _focal_loss_ref(logits, target, *, gamma=0.0, size_average=True):
    if logits.ndim > 2:
        B, C = logits.shape[0], logits.shape[1]
        x2d = jnp.transpose(logits.reshape(B, C, -1), (0, 2, 1)).reshape(-1, C)
    else:
        x2d = logits
    t = target.reshape(-1)
    logp = jax.nn.log_softmax(x2d.astype(jnp.float32), axis=1)
    logpt = jnp.take_along_axis(logp, t[:, None].astype(jnp.int32), axis=1)[:, 0]
    pt = jnp.exp(logpt)
    loss = -((1.0 - pt) ** gamma) * logpt if gamma != 0 else -logpt
    return jnp.mean(loss) if size_average else jnp.sum(loss)


if __name__ == "__main__":
    key = jax.random.PRNGKey(0)
    k1, k2, k3, k4, k5, k6 = jax.random.split(key, 6)

    # Case 1: canonical NCHW input, default auto-tiling / auto core count.
    B, C, H, W = 2, 4, 16, 16
    x = jax.random.normal(k1, (B, C, H, W), dtype=jnp.float32)
    tgt = jax.random.randint(k2, (B, H, W), 0, C, dtype=jnp.int32)

    out = jax.block_until_ready(focal_loss(x, tgt, gamma=2.0, size_average=True))
    ref = _focal_loss_ref(x, tgt, gamma=2.0, size_average=True)
    assert jnp.allclose(out, ref, atol=1e-5, rtol=1e-5), (out, ref)

    out2 = jax.block_until_ready(focal_loss(x, tgt, gamma=0.0, size_average=False))
    ref2 = _focal_loss_ref(x, tgt, gamma=0.0, size_average=False)
    assert jnp.allclose(out2, ref2, atol=1e-4, rtol=1e-5), (out2, ref2)

    # Case 2: ragged spatial extent + forced 2-way core split (exercises the v7x
    # two-TensorCore path; runs serially-correct on single-core chips).
    B2, C2, H2, W2 = 2, 5, 18, 18
    x2 = jax.random.normal(k3, (B2, C2, H2, W2), dtype=jnp.float32)
    tgt2 = jax.random.randint(k4, (B2, H2, W2), 0, C2, dtype=jnp.int32)
    out3 = jax.block_until_ready(
        focal_loss(x2, tgt2, gamma=2.0, size_average=True, t_hw=128, num_cores=2))
    ref3 = _focal_loss_ref(x2, tgt2, gamma=2.0, size_average=True)
    assert jnp.allclose(out3, ref3, atol=1e-5, rtol=1e-5), (out3, ref3)

    # Case 3: 2-D (N, C) fallback path (no wrapper transpose), fractional gamma.
    N3, C3 = 48, 7
    x3 = jax.random.normal(k5, (N3, C3), dtype=jnp.float32)
    tgt3 = jax.random.randint(k6, (N3,), 0, C3, dtype=jnp.int32)
    out4 = jax.block_until_ready(focal_loss(x3, tgt3, gamma=1.5, size_average=True))
    ref4 = _focal_loss_ref(x3, tgt3, gamma=1.5, size_average=True)
    assert jnp.allclose(out4, ref4, atol=1e-5, rtol=1e-5), (out4, ref4)

    print("KERNEL_OK")
</pallas_src>

<mosaic_0001>
module attributes {stable_mosaic.version = 11 : i64} {
  func.func @_focal_kernel_nchw(%arg0: i32, %arg1: i32, %arg2: i32, %arg3: memref<1x4x256xf32, #tpu.memory_space<vmem>>, %arg4: memref<1x1x256xi32, #tpu.memory_space<vmem>>, %arg5: memref<1x128xf32, #tpu.memory_space<vmem>>, %arg6: memref<1x256xf32, #tpu.memory_space<vmem>>) attributes {dimension_semantics = [#tpu.dimension_semantics<parallel>, #tpu.dimension_semantics<arbitrary>, #tpu.dimension_semantics<arbitrary>], iteration_bounds = array<i64: 1, 2, 1>, scalar_prefetch = 0 : i64, scratch_operands = 1 : i64, tpu.core_type = #tpu.core_type<tc>, window_params = [{transform_indices = @transform_0, window_bounds = array<i64: 1, 4, 256>}, {transform_indices = @transform_1, window_bounds = array<i64: 1, 1, 256>}, {transform_indices = @transform_2, window_bounds = array<i64: 1, 128>}]} {
    %c0_i32 = arith.constant 0 : i32
    %0 = arith.cmpi eq, %arg1, %c0_i32 : i32
    %c0_i32_0 = arith.constant 0 : i32
    %1 = arith.cmpi eq, %arg2, %c0_i32_0 : i32
    %2 = arith.andi %0, %1 : i1
    %3 = arith.extui %2 : i1 to i32
    %c0_i32_1 = arith.constant 0 : i32
    %4 = arith.cmpi ne, %3, %c0_i32_1 : i32
    scf.if %4 {
      %cst_18 = arith.constant 0.000000e+00 : f32
      %41 = vector.broadcast %cst_18 : f32 to vector<1x256xf32>
      %c0_19 = arith.constant 0 : index
      %c0_20 = arith.constant 0 : index
      %42 = vector.load %arg6[%c0_19, %c0_20] : memref<1x256xf32, #tpu.memory_space<vmem>>, vector<1x256xf32>
      tpu.vector_store %arg6[%c0_19, %c0_20], %41 {strides = array<i32>} : memref<1x256xf32, #tpu.memory_space<vmem>>, vector<1x256xf32>,
    } else {
    }
    %c0 = arith.constant 0 : index
    %c0_2 = arith.constant 0 : index
    %c0_3 = arith.constant 0 : index
    %5 = vector.load %arg3[%c0, %c0_2, %c0_3] : memref<1x4x256xf32, #tpu.memory_space<vmem>>, vector<1x4x256xf32>
    %6 = vector.shape_cast %5 : vector<1x4x256xf32> to vector<4x256xf32>
    %cst = arith.constant dense<0xFF800000> : vector<256xf32>
    %7 = vector.multi_reduction <maximumf>, %6, %cst [0] : vector<4x256xf32> to vector<256xf32>
    %8 = vector.shape_cast %7 : vector<256xf32> to vector<1x256xf32>
    %9 = vector.broadcast %8 : vector<1x256xf32> to vector<4x256xf32>
    %10 = arith.subf %6, %9 : vector<4x256xf32>
    %11 = math.exp %10 : vector<4x256xf32>
    %cst_4 = arith.constant dense<0.000000e+00> : vector<256xf32>
    %12 = vector.multi_reduction <add>, %11, %cst_4 [0] : vector<4x256xf32> to vector<256xf32>
    %13 = vector.shape_cast %12 : vector<256xf32> to vector<1x256xf32>
    %14 = math.log %13 : vector<1x256xf32>
    %15 = vector.broadcast %14 : vector<1x256xf32> to vector<4x256xf32>
    %16 = arith.subf %10, %15 : vector<4x256xf32>
    %c0_5 = arith.constant 0 : index
    %c0_6 = arith.constant 0 : index
    %c0_7 = arith.constant 0 : index
    %17 = vector.load %arg4[%c0_5, %c0_6, %c0_7] : memref<1x1x256xi32, #tpu.memory_space<vmem>>, vector<1x1x256xi32>
    %18 = vector.shape_cast %17 : vector<1x1x256xi32> to vector<1x256xi32>
    %19 = tpu.iota {dimensions = array<i32: 0>} : vector<4x256xi32>
    %20 = vector.broadcast %18 : vector<1x256xi32> to vector<4x256xi32>
    %21 = arith.cmpi eq, %19, %20 : vector<4x256xi32>
    %cst_8 = arith.constant 0.000000e+00 : f32
    %22 = vector.broadcast %cst_8 : f32 to vector<4x256xf32>
    %23 = arith.select %21, %16, %22 : vector<4x256xi1>, vector<4x256xf32>
    %cst_9 = arith.constant dense<0.000000e+00> : vector<256xf32>
    %24 = vector.multi_reduction <add>, %23, %cst_9 [0] : vector<4x256xf32> to vector<256xf32>
    %25 = vector.shape_cast %24 : vector<256xf32> to vector<1x256xf32>
    %26 = math.exp %25 : vector<1x256xf32>
    %cst_10 = arith.constant 1.000000e+00 : f32
    %27 = vector.broadcast %cst_10 : f32 to vector<1x256xf32>
    %28 = arith.subf %27, %26 : vector<1x256xf32>
    %29 = arith.mulf %28, %28 : vector<1x256xf32>
    %30 = arith.mulf %29, %25 : vector<1x256xf32>
    %cst_11 = arith.constant 0.000000e+00 : f32
    %31 = vector.broadcast %cst_11 : f32 to vector<1x256xf32>
    %32 = arith.subf %31, %30 : vector<1x256xf32>
    %c0_12 = arith.constant 0 : index
    %c0_13 = arith.constant 0 : index
    %33 = vector.load %arg6[%c0_12, %c0_13] : memref<1x256xf32, #tpu.memory_space<vmem>>, vector<1x256xf32>
    %34 = arith.addf %33, %32 : vector<1x256xf32>
    %c0_14 = arith.constant 0 : index
    %c0_15 = arith.constant 0 : index
    %35 = vector.load %arg6[%c0_14, %c0_15] : memref<1x256xf32, #tpu.memory_space<vmem>>, vector<1x256xf32>
    tpu.vector_store %arg6[%c0_14, %c0_15], %34 {strides = array<i32>} : memref<1x256xf32, #tpu.memory_space<vmem>>, vector<1x256xf32>,
    %c1_i32 = arith.constant 1 : i32
    %36 = arith.cmpi eq, %arg1, %c1_i32 : i32
    %c0_i32_16 = arith.constant 0 : i32
    %37 = arith.cmpi eq, %arg2, %c0_i32_16 : i32
    %38 = arith.andi %36, %37 : i1
    %39 = arith.extui %38 : i1 to i32
    %c0_i32_17 = arith.constant 0 : i32
    %40 = arith.cmpi ne, %39, %c0_i32_17 : i32
    scf.if %40 {
      %c0_18 = arith.constant 0 : index
      %c0_19 = arith.constant 0 : index
      %41 = vector.load %arg6[%c0_18, %c0_19] : memref<1x256xf32, #tpu.memory_space<vmem>>, vector<1x256xf32>
      %42 = vector.shape_cast %41 : vector<1x256xf32> to vector<1x1x256xf32>
      %cst_20 = arith.constant dense<0.000000e+00> : vector<1xf32>
      %43 = vector.multi_reduction <add>, %42, %cst_20 [1, 2] : vector<1x1x256xf32> to vector<1xf32>
      %44 = vector.shape_cast %43 : vector<1xf32> to vector<1x1x1xf32>
      %45 = vector.extract %44[0, 0, 0] : f32 from vector<1x1x1xf32>
      %46 = tpu.iota {dimensions = array<i32: 1>} : vector<1x128xi32>
      %c0_i32_21 = arith.constant 0 : i32
      %47 = vector.broadcast %c0_i32_21 : i32 to vector<1x128xi32>
      %48 = arith.cmpi eq, %46, %47 : vector<1x128xi32>
      %cst_22 = arith.constant 0.000000e+00 : f32
      %49 = vector.broadcast %45 : f32 to vector<1x128xf32>
      %50 = vector.broadcast %cst_22 : f32 to vector<1x128xf32>
      %51 = arith.select %48, %49, %50 : vector<1x128xi1>, vector<1x128xf32>
      %c0_23 = arith.constant 0 : index
      %c0_24 = arith.constant 0 : index
      %52 = vector.load %arg5[%c0_23, %c0_24] : memref<1x128xf32, #tpu.memory_space<vmem>>, vector<1x128xf32>
      tpu.vector_store %arg5[%c0_23, %c0_24], %51 {strides = array<i32>} : memref<1x128xf32, #tpu.memory_space<vmem>>, vector<1x128xf32>,
    } else {
    }
    return
  }
  func.func @transform_0(%arg0: i32, %arg1: i32, %arg2: i32) -> (i32, i32, i32) {
    %c1_i32 = arith.constant 1 : i32
    %0 = arith.muli %arg0, %c1_i32 : i32
    %1 = arith.addi %0, %arg2 : i32
    %c0_i32 = arith.constant 0 : i32
    %c0_i32_0 = arith.constant 0 : i32
    return %arg1, %c0_i32, %1 : i32, i32, i32
  }
  func.func @transform_1(%arg0: i32, %arg1: i32, %arg2: i32) -> (i32, i32, i32) {
    %c1_i32 = arith.constant 1 : i32
    %0 = arith.muli %arg0, %c1_i32 : i32
    %1 = arith.addi %0, %arg2 : i32
    %c0_i32 = arith.constant 0 : i32
    %c0_i32_0 = arith.constant 0 : i32
    return %arg1, %c0_i32, %1 : i32, i32, i32
  }
  func.func @transform_2(%arg0: i32, %arg1: i32, %arg2: i32) -> (i32, i32) {
    %c0_i32 = arith.constant 0 : i32
    %c0_i32_0 = arith.constant 0 : i32
    return %c0_i32, %arg0 : i32, i32
  }
}

</mosaic_0001>

<bundles_post_ra>
// kernel: tpu_custom_call.1
= control target key start
LH: loop header
LB: loop body
LE: loop exit
PB: predicated region body
PF: predicated region fallthrough
CT: control target
= control target key end

     0   :  { %7 = vsyncpa [#allocation4], 0  ;;  %s977_s0 = inlined_call_operand.hbm [shape: f32[2,4,256], index: 0, kind: input, shape index: {}]   ;;  %s978_s1 = inlined_call_operand.hbm [shape: s32[2,1,256], index: 1, kind: input, shape index: {}]   ;;  %s979_s2 = inlined_call_operand.hbm [shape: f32[1,128], index: 2, kind: output, shape index: {}]  }
   0x1   :  { %9 = vsyncpa [#allocation4 + $0x1], 0 }
   0x2   :  { %10 = vsyncpa [#allocation7], 0 }
   0x3   :  { %12 = vsyncpa [#allocation7 + $0x1], 0 }
   0x4   :  { %13 = vsyncpa [#allocation5], 0  ;;  %s770_s9 = smov 0   ;;  %s772_s10 = smov 0  }
   0x5   :  { %s774_s11 = smov 0   ;;  %s776_s12 = smov 0  }
   0x6   :  { %s778_s13 = smov 0   ;;  %s780_s14 = smov 0  }
   0x7 LB: > { %s500_s15 = sadd.s32 4294967295, %s748_s14   ;;  %s34_s16 = sadd.s32 1, %s744_s13  ;;  %s748_s14 = sphi %s780_s14, %s19_s14   ;;  %s744_s13 = sphi %s778_s13, %s994_s13   ;;  %s740_s12 = sphi %s776_s12, %s993_s12   ;;  %s736_s11 = sphi %s774_s11, %s992_s11   ;;  %s732_s10 = sphi %s772_s10, %s991_s10   ;;  %s728_s9 = sphi %s770_s9, %s990_s9  }
   0x8   : > { %p36_p0 = scmp.ge.s32.totalorder %s34_s16, 2  ;;  %s49_s17 = sadd.s32 1, %s736_s11 }
   0x9   : > { %p56_p1 = scmp.ne.s32.totalorder %s736_s11, %s732_s10  ;;  %p57_p2 = scmp.eq.s32.totalorder %s748_s14, 0 }
   0xa   : > { %s996_s16 = smov (%p36_p0, %s34_s16), 0  ;;  %p62_p4 = scmp.ne.s32.totalorder %s732_s10, %s728_s9 }
   0xb   : > { %p806_p3 = por %p57_p2, %p56_p1  ;;  %s44_s19 = ssub.s32 %s744_s13, %s996_s16 }
   0xc   : > { %p63_p5 = scmp.eq.s32.totalorder %s500_s15, 0  ;;  %p47_p6 = scmp.eq.s32.totalorder %s44_s19, 0 }
   0xd   : > { %p539_p8 = scmp.lt.s32.totalorder %s748_s14, 2  ;;  %s824_s22 = sand.u32 1, %s736_s11  }
   0xe   : > { %p815_p7 = por %p63_p5, %p62_p4  ;;  %s518_s23 = sshll.u32 %s744_s13, 7 }
   0xf   : > { %s821_s21 = scalar_select %p47_p6, %s736_s11, %s49_s17  }
  0x10   : > { %s982_s20 = scalar_select %p815_p7, 1, 0 }
  0x11   : > { %s503_s24 = sshll.u32 %s824_s22, 3  ;;  %s831_s27 = scalar_lea.hbm %s977_s0, %s518_s23 }
  0x12   : > { %s146_s28 = scalar_lea.vmem [#allocation3], %s503_s24  ;;  %p835_p9 = pnand %p539_p8, %p806_p3 }
  0x13   : > { %s157_s29 = sshll.u32 %s146_s28, 4  ;;  %s143_s3 = scalar_lea.sflag [#allocation4], %s824_s22  ;;  %s839_s29 = int_to_ptr.vmem [resolvable:$true] %s157_s29 }
  0x14   : > { %s604_s4 = scalar_lea.hbm %s831_s27, 128  ;;  %p606_p13 = pneg %p835_p9 }
  0x15   : > { %p605_p12 = scmp.ne.s32.totalorder %s831_s27, %s604_s4  ;;  %s609_s7 = scalar_lea.hbm %s977_s0, 256 }
  0x16   : > { %p610_p2 = scmp.lt.u32.totalorder %s831_s27, %s977_s0  ;;  %p611_p3 = scmp.lt.u32.totalorder %s609_s7, %s604_s4 }
  0x17   : > { %p607_p0 = pnand %p606_p13, %p605_p12  ;;  %p613_p5 = scmp.lt.u32.totalorder %s604_s4, %s831_s27 }
  0x18   : > { %p612_p4 = por %p611_p3, %p610_p2 }
  0x19   : > { %p608_p1 = pneg %p607_p0 }
  0x1a   : > { %p614_p6 = por %p613_p5, %p612_p4 }
  0x1c   : > { %p615_p8 = pnand %p614_p6, %p608_p1 }
  0x1e   : > { %618 = shalt.err (!%p615_p8)
}
  0x1f   : > { %s619_s17 = scalar_lea.vmem %s839_s29, 128  ;;  %s750_s18 = smov [#allocation3]  }
  0x20   : > { %p620_p12 = scmp.ne.s32.totalorder %s839_s29, %s619_s17  ;;  %s624_s19 = sshll.u32 %s750_s18, 4  ;;  %s625_s19 = int_to_ptr.vmem [resolvable:$false] %s624_s19 }
  0x21   : > { %s626_s23 = scalar_lea.vmem %s625_s19, 256  ;;  %p627_p11 = scmp.lt.s32.totalorder %s839_s29, %s625_s19 }
  0x22   : > { %p622_p0 = pnand %p620_p12, %p606_p13  ;;  %p628_p2 = scmp.lt.s32.totalorder %s626_s23, %s619_s17 }
  0x24   : > { %p623_p10 = pneg %p622_p0  ;;  %p629_p3 = por %p628_p2, %p627_p11 }
  0x26   : > { %p630_p4 = pnand %p629_p3, %p623_p10 }
  0x28   : > { %633 = shalt.err (!%p630_p4)
}
  0x29   : > { %535 = dma.hbm_to_vmem [thread:$0]  (!%p835_p9), %s831_s27, 128, %s839_s29, %s143_s3  }
  0x2a   : > { %p984_p1 = scmp.lt.s32.totalorder %s748_s14, 3  ;;  %p985_p5 = scmp.ge.s32.totalorder %s748_s14, 1 }
  0x2b   : > { %s506_s25 = sshll.u32 %s824_s22, 1  ;;  %s519_s26 = sshll.u32 %s744_s13, 5 }
  0x2c   : > { %p873_p6 = pnand %p985_p5, %p984_p1  ;;  %s882_s5 = scalar_lea.hbm %s978_s1, %s519_s26 }
  0x2d   : > { %s168_s6 = scalar_lea.vmem [#allocation6], %s506_s25  ;;  %s165_s27 = scalar_lea.sflag [#allocation7], %s824_s22 }
  0x2e   : > { %s986_s24 = scalar_select %p873_p6, 1, 0 }
  0x2f   : > { %s179_s7 = sshll.u32 %s168_s6, 4  ;;  %s634_s29 = scalar_lea.hbm %s882_s5, 32  ;;  %s180_s7 = int_to_ptr.vmem [resolvable:$true] %s179_s7 }
  0x30   : > { %p635_p10 = scmp.ne.s32.totalorder %s882_s5, %s634_s29  ;;  %s639_s9 = scalar_lea.hbm %s978_s1, 64 }
  0x31   : > { %p640_p12 = scmp.lt.u32.totalorder %s882_s5, %s978_s1  ;;  %p641_p0 = scmp.lt.u32.totalorder %s639_s9, %s634_s29 }
  0x32   : > { %p637_p11 = pnand %p635_p10, %p606_p13  ;;  %p643_p3 = scmp.lt.u32.totalorder %s634_s29, %s882_s5 }
  0x33   : > { %p642_p2 = por %p641_p0, %p640_p12 }
  0x34   : > { %p638_p8 = pneg %p637_p11 }
  0x35   : > { %p644_p4 = por %p643_p3, %p642_p2 }
  0x37   : > { %p645_p1 = pnand %p644_p4, %p638_p8 }
  0x39   : > { %648 = shalt.err (!%p645_p1)
}
  0x3a   : > { %s649_s22 = scalar_lea.vmem %s180_s7, 32  ;;  %s751_s19 = smov [#allocation6]  }
  0x3b   : > { %p650_p5 = scmp.ne.s32.totalorder %s180_s7, %s649_s22  ;;  %s654_s23 = sshll.u32 %s751_s19, 4  ;;  %s655_s23 = int_to_ptr.vmem [resolvable:$false] %s654_s23 }
  0x3c   : > { %s656_s25 = scalar_lea.vmem %s655_s23, 64  ;;  %p657_p7 = scmp.lt.s32.totalorder %s180_s7, %s655_s23 }
  0x3d   : > { %p652_p10 = pnand %p650_p5, %p606_p13  ;;  %p658_p6 = scmp.lt.s32.totalorder %s656_s25, %s649_s22 }
  0x3f   : > { %p653_p11 = pneg %p652_p10  ;;  %p659_p0 = por %p658_p6, %p657_p7 }
  0x41   : > { %p660_p12 = pnand %p659_p0, %p653_p11 }
  0x43   : > { %663 = shalt.err (!%p660_p12)
}
  0x44   : > { %538 = dma.hbm_to_vmem [thread:$0]  (!%p835_p9), %s882_s5, 32, %s180_s7, %s165_s27  }
  0x45   : > { %p987_p8 = scmp.ne.s32.totalorder %s986_s24, 0 }
  0x46   : > { %s190_s26 = sand.u32 (!%p987_p8), 1, %s732_s10   ;;  %p988_p13 = scmp.ne.s32.totalorder (!%p987_p8), %s982_s20, 0 }
  0x47   : > { %188 = sbr.rel (%p987_p8) target bundleno = 446 (0x1be), region = 28  ;;  %s510_s28 = sshll.u32 (!%p987_p8), %s190_s26, 3 }
  0x48   : > { %s191_s4 = scalar_lea.sflag (!%p987_p8), [#allocation4], %s190_s26  ;;  %s194_s6 = scalar_lea.vmem (!%p987_p8), [#allocation3], %s510_s28 }
  0x4e   : > { %715 = dma.done.wait (%p988_p13), %s191_s4, 128  }
  0x4f   : > { %717 = vsyncadd (%p988_p13), %s191_s4, 4294967168  ;;  %s511_s29 = sshll.u32 %s190_s26, 1  ;;  %s200_s3 = scalar_lea.sflag [#allocation7], %s190_s26 }
  0x50   : > { %s911_s30 = scalar_lea.vmem [#allocation6], %s511_s29 }
  0x51   : > { %719 = dma.done.wait (%p988_p13), %s200_s3, 32  }
  0x52   : > { %721 = vsyncadd (%p988_p13), %s200_s3, 4294967264  ;;  %p228_p7 = scmp.eq.s32.totalorder %s740_s12, 0 }
  0x53   : > { %v234_v0 = vlaneseq (%p228_p7)  ;;  %v752_v1 = vmov (%p228_p7), 0.0  }
  0x54   : > { %233 = sbr.rel (!%p228_p7) target bundleno = 91 (0x5b), region = 40 }
  0x55   : > { %vm236_vm0 = vcmp.lt.s32.totalorder (%p228_p7), %v234_v0, 256 }
  0x56   : > { %238 = vst.msk [vmem:[#allocation2] sm:$0x3] (%p228_p7), %vm236_vm0, %v752_v1 }
  0x5b PF: > { %v239_v2 = vld [vmem:[%s194_s6] sm:$0xff]  ;;  %vm243_vm1 = vcmask 1043456   ;;  %p360_p9 = scmp.eq.s32.totalorder %s740_s12, 1  ;;  %v292_v37 = vlaneseq  ;;  %v291_v40 = vld [vmem:[%s911_s30] sm:$0x3] }
  0x5c   : > { %v241_v3 = vcombine.high %v239_v2, %v239_v2  ;;  %v244_v4 = vsel %vm243_vm1, %v239_v2, -inf  ;;  %vm377_vm5 = vcmask (%p360_p9), 1040384  }
  0x5d   : > { %v245_v5 = vrot.slane %v244_v4, 4  ;;  %v293_v38 = vshrl.u32 %v292_v37, 7  ;;  %vm357_vm4 = vcmp.lt.s32.totalorder %v292_v37, 256 }
  0x5e   : > { %v251_v6 = vsel %vm243_vm1, %v241_v3, -inf }
  0x5f   : > { %v246_v7 = vmax.f32 %v244_v4, %v245_v5  ;;  %v252_v8 = vrot.slane %v251_v6, 4  ;;  %v296_v39 = vsub.s32 0, %v293_v38  ;;  %v300_v42 = vsub.s32 1, %v293_v38 }
  0x61   : > { %v247_v9 = vrot.slane %v246_v7, 2  ;;  %v253_v10 = vmax.f32 %v251_v6, %v252_v8  ;;  %v297_v45 = vrot.slane %v291_v40, %v296_v39  ;;  %v301_v47 = vrot.slane %v291_v40, %v300_v42 }
  0x63   : > { %v248_v11 = vmax.f32 %v246_v7, %v247_v9  ;;  %v254_v12 = vrot.slane %v253_v10, 2  ;;  %vm302_vm2 = vcmp.eq.s32.totalorder %v293_v38, %v297_v45  ;;  %vm303_vm3 = vcmp.eq.s32.totalorder %v293_v38, %v301_v47 }
  0x64   : > { %v753_v7 = vmov 1966171168  }
  0x65   : > { %v249_v13 = vrot.slane %v248_v11, 1  ;;  %v255_v14 = vmax.f32 %v253_v10, %v254_v12  ;;  %v340_v8 = vunpack.c.l.s4 %v753_v7 }
  0x67   : > { %v250_v15 = vmax.f32 %v248_v11, %v249_v13  ;;  %v256_v16 = vrot.slane %v255_v14, 1 }
  0x69   : > { %v257_v17 = vmax.f32 %v255_v14, %v256_v16  ;;  %v341_v14 = vunpack.c.0.s8 %v340_v8 }
  0x6b   : > { %v260_v18 = vcombine.low %v250_v15, %v257_v17 }
  0x6d   : > { %v262_v19 = vsub.f32 %v239_v2, %v260_v18  ;;  %v344_v18 = vsub.s32 %v341_v14, %v293_v38  ;;  %v391_v38 = vand.u32 (%p360_p9), 127, %v292_v37 }
  0x6f   : > { %v263_v20 = vmul.f32 1.442695, %v262_v19  ;;  %vm392_vm6 = vcmp.eq.s32.totalorder (%p360_p9), %v391_v38, 0 }
  0x71   : > { %594 = vpow2.f32 %v263_v20 }
  0x7b   : > { %v595_v21 = vpop.eup %594 }
  0x7c   : > { %v266_v22 = vcombine.high %v595_v21, %v595_v21  ;;  %v268_v23 = vsel %vm243_vm1, %v595_v21, 0.0  ;;  %v335_v21 = vld [vmem:[#allocation2] sm:$0x3] }
  0x7d   : > { %v269_v24 = vrot.slane %v268_v23, 4 }
  0x7e   : > { %v275_v25 = vsel %vm243_vm1, %v266_v22, 0.0 }
  0x7f   : > { %v270_v26 = vadd.f32 %v269_v24, %v268_v23  ;;  %v276_v27 = vrot.slane %v275_v25, 4 }
  0x81   : > { %v271_v28 = vrot.slane %v270_v26, 2  ;;  %v277_v29 = vadd.f32 %v276_v27, %v275_v25 }
  0x83   : > { %v272_v30 = vadd.f32 %v271_v28, %v270_v26  ;;  %v278_v31 = vrot.slane %v277_v29, 2 }
  0x85   : > { %v273_v32 = vrot.slane %v272_v30, 1  ;;  %v279_v33 = vadd.f32 %v278_v31, %v277_v29 }
  0x87   : > { %v274_v34 = vadd.f32 %v273_v32, %v272_v30  ;;  %v280_v35 = vrot.slane %v279_v33, 1 }
  0x89   : > { %v281_v36 = vadd.f32 %v280_v35, %v279_v33  ;;  %596 = vlog2.f32 %v274_v34 }
  0x8b   : > { %598 = vlog2.f32 %v281_v36 }
  0x93   : > { %v597_v41 = vpop.eup %596 }
  0x94   : > { %v283_v43 = vmul.f32 0.6931472, %v597_v41 }
  0x95   : > { %v599_v44 = vpop.eup %598 }
  0x96   : > { %v285_v46 = vmul.f32 0.6931472, %v599_v44 }
  0x98   : > { %v288_v48 = vcombine.low %v283_v43, %v285_v46 }
  0x9a   : > { %v290_v49 = vsub.f32 %v262_v19, %v288_v48 }
  0x9c   : > { %v305_v50 = vcombine.high %v290_v49, %v290_v49  ;;  %v307_v51 = vsel %vm302_vm2, %v290_v49, 0.0 }
  0x9d   : > { %v309_v52 = vsel %vm243_vm1, %v307_v51, 0.0 }
  0x9e   : > { %v308_v53 = vsel %vm303_vm3, %v305_v50, 0.0  ;;  %v310_v54 = vrot.slane %v309_v52, 4 }
  0x9f   : > { %v316_v55 = vsel %vm243_vm1, %v308_v53, 0.0 }
  0xa0   : > { %v311_v56 = vadd.f32 %v310_v54, %v309_v52  ;;  %v317_v57 = vrot.slane %v316_v55, 4 }
  0xa2   : > { %v312_v58 = vrot.slane %v311_v56, 2  ;;  %v318_v59 = vadd.f32 %v317_v57, %v316_v55 }
  0xa4   : > { %v313_v60 = vadd.f32 %v312_v58, %v311_v56  ;;  %v319_v61 = vrot.slane %v318_v59, 2 }
  0xa6   : > { %v314_v62 = vrot.slane %v313_v60, 1  ;;  %v320_v63 = vadd.f32 %v319_v61, %v318_v59 }
  0xa8   : > { %v315_v0 = vadd.f32 %v314_v62, %v313_v60  ;;  %v321_v1 = vrot.slane %v320_v63, 1 }
  0xaa   : > { %v322_v2 = vadd.f32 %v321_v1, %v320_v63  ;;  %v323_v3 = vmul.f32 1.442695, %v315_v0 }
  0xac   : > { %600 = vpow2.f32 %v323_v3  ;;  %v325_v4 = vmul.f32 1.442695, %v322_v2 }
  0xae   : > { %602 = vpow2.f32 %v325_v4 }
  0xb6   : > { %v601_v5 = vpop.eup %600 }
  0xb7   : > { %v327_v6 = vsub.f32 1.0, %v601_v5 }
  0xb8   : > { %v603_v9 = vpop.eup %602 }
  0xb9   : > { %v328_v10 = vsub.f32 1.0, %v603_v9  ;;  %v329_v11 = vmul.f32 %v327_v6, %v327_v6 }
  0xbb   : > { %v330_v12 = vmul.f32 %v328_v10, %v328_v10  ;;  %v331_v13 = vmul.f32 %v329_v11, %v315_v0 }
  0xbd   : > { %v332_v15 = vmul.f32 %v330_v12, %v322_v2  ;;  %v333_v16 = vsub.f32 0.0, %v331_v13 }
  0xbf   : > { %v334_v17 = vsub.f32 0.0, %v332_v15 }
  0xc1   : > { %v338_v19 = vcombine.low %v333_v16, %v334_v17 }
  0xc3   : > { %v345_v20 = vrot.slane %v338_v19, %v344_v18  ;;  %364 = sbr.rel (!%p360_p9) target bundleno = 421 (0x1a5), region = 44 }
  0xc5   : > { %v352_v22 = vrot.slane %v345_v20, %v344_v18 }
  0xc7   : > { %v354_v23 = vadd.f32 %v352_v22, %v335_v21 }
  0xc9   : > { %359 = vst.msk [vmem:[#allocation2] sm:$0x3] %vm357_vm4, %v354_v23 }
  0xd0   : > { %v365_v24 = vld [vmem:[#allocation2] sm:$0x3] }
  0xd1   : > { %v370_v25 = vrot.slane %v365_v24, %v296_v39  ;;  %v374_v26 = vrot.slane %v365_v24, %v300_v42 }
  0xd3   : > { %v378_v27 = vsel %vm377_vm5, %v370_v25, 0.0  ;;  %v379_v28 = vsel %vm377_vm5, %v374_v26, 0.0 }
  0xd4   : > { %v380_v29 = vadd.f32 %v379_v28, %v378_v27 }
  0xd6   : > { %381 = vadd.xlane.f32.xlu0 %v380_v29 }
 0x163   : > { %v382_v30 = vpop.xlane.xlu0 %381 }
 0x164   : > { %v383_v31 = vrot.slane %v382_v30, 4 }
 0x166   : > { %v384_v32 = vadd.f32 %v383_v31, %v382_v30 }
 0x168   : > { %v385_v33 = vrot.slane %v384_v32, 2 }
 0x16a   : > { %v386_v34 = vadd.f32 %v385_v33, %v384_v32 }
 0x16c   : > { %v387_v35 = vrot.slane %v386_v34, 1 }
 0x16e   : > { %v388_v36 = vadd.f32 %v387_v35, %v386_v34 }
 0x170   : > { %522 = vpush %v388_v36 }
 0x1a1   : > { %s523_s12 = spop %522 }
 0x1a2   : > { %v393_v40 = vstv %s523_s12 }
 0x1a3   : > { %v394_v41 = vsel %vm392_vm6, %v393_v40, 0.0 }
 0x1a4   : > { %395 = vst [vmem:[#allocation8] sm:$0x1] %v394_v41 }
 0x1a5 PF: > { %p933_p6 = scmp.eq.s32.totalorder %s500_s15, 1  ;;  %s754_s24 = smov [#allocation8]  }
 0x1a6   : > { %s405_s5 = sshll.u32 %s754_s24, 4  ;;  %s406_s5 = int_to_ptr.vmem [resolvable:$true] %s405_s5 }
 0x1a7   : > { %s664_s7 = scalar_lea.vmem %s406_s5, 16  ;;  %s670_s27 = scalar_lea.vmem %s406_s5, 32 }
 0x1a8   : > { %p665_p2 = scmp.ne.s32.totalorder %s406_s5, %s664_s7  ;;  %p671_p1 = scmp.lt.s32.totalorder %s406_s5, %s406_s5 }
 0x1a9   : > { %p672_p5 = scmp.lt.s32.totalorder %s670_s27, %s664_s7 }
 0x1aa   : > { %p666_p3 = pnand %p665_p2, %p933_p6 }
 0x1ab   : > { %p673_p10 = por %p672_p5, %p671_p1 }
 0x1ac   : > { %p667_p4 = pneg %p666_p3 }
 0x1ae   : > { %p674_p11 = pnand %p673_p10, %p667_p4 }
 0x1b0   : > { %677 = shalt.err (!%p674_p11)
}
 0x1b1   : > { %s678_s9 = scalar_lea.hbm %s979_s2, 16 }
 0x1b2   : > { %p679_p0 = scmp.ne.s32.totalorder %s979_s2, %s678_s9  ;;  %p684_p13 = scmp.lt.u32.totalorder %s678_s9, %s979_s2 }
 0x1b4   : > { %p680_p12 = pnand %p679_p0, %p933_p6 }
 0x1b6   : > { %p681_p8 = pneg %p680_p12 }
 0x1b8   : > { %p686_p7 = pnand %p684_p13, %p681_p8 }
 0x1ba   : > { %689 = shalt.err (!%p686_p7)
}
 0x1bb   : > { %529 = dma.vmem_to_hbm [thread:$0]  (%p933_p6), %s406_s5, 16, %s979_s2, [#allocation5]  }
 0x1bc   : > { %723 = dma.done.wait (%p933_p6), [#allocation5], 16  }
 0x1bd   : > { %725 = vsyncadd (%p933_p6), [#allocation5], 4294967280 }
 0x1be PF: > { %s19_s14 = sadd.s32 1, %s748_s14   ;;  %s990_s9 = smov %s732_s10 }
 0x1bf   : > { %p16_p9 = scmp.ge.s32.totalorder %s19_s14, 4   ;;  %s991_s10 = smov %s736_s11 }
 0x1c0   : > { %s992_s11 = smov %s821_s21  ;;  %s993_s12 = smov %s744_s13 }
 0x1c1   : > { %s994_s13 = smov %s996_s16  ;;  %18 = sbr.rel (!%p16_p9) target bundleno = 7 (0x7), region = 87 }
 0x1c8   :  { %418 = vsyncpa [#allocation4], 1 }
 0x1c9   :  { %420 = vsyncpa [#allocation4 + $0x1], 1 }
 0x1ca   :  { %421 = vsyncpa [#allocation7], 1 }
 0x1cb   :  { %423 = vsyncpa [#allocation7 + $0x1], 1 }
 0x1cc   :  { %424 = vsyncpa [#allocation5], 1 }
 0x1cd   :  { %426 = vsyncpa [#allocation5 + $0x1], 1 }

</bundles_post_ra>
